<compile_context>
chip_gen: v5e
topology: v5e:2x2
jax: 0.10.0
libtpu: 0.0.40
codegen_flags: <defaults>
</compile_context>

<pallas_src>
import functools

import jax
import jax.numpy as jnp
from jax.experimental import pallas as pl
from jax.experimental.pallas import tpu as pltpu

_LANES = 128
_SUBLANES = 8
_MAX_ROW_TILE = 2048  # 2048 x 128 x 4B = 1 MiB per f32 input block


def _silog_partial_kernel(ip_ref, tgt_ref, acc_ref, *,
                          steps_per_split, nrows, needs_tail_mask):
    split = pl.program_id(0)
    step = pl.program_id(1)

    @pl.when(step == 0)
    def _init():
        acc_ref[...] = jnp.zeros_like(acc_ref)

    row_tile = ip_ref.shape[0]
    g = row_tile // _SUBLANES

    # Native-dtype load (bf16 inputs halve HBM traffic), widen in-register,
    # then a layout-preserving split of the sublane-major dim.
    ip = ip_ref[...].astype(jnp.float32).reshape(g, _SUBLANES, _LANES)
    tgt = tgt_ref[...].astype(jnp.float32).reshape(g, _SUBLANES, _LANES)

    # Validity mask from the reference: 1 < target < 81.
    mask = (tgt > 1.0) & (tgt < 81.0)

    if needs_tail_mask:
        # Ragged last tile / clamped duplicate tiles: rows at or past the true
        # row count hold garbage (Pallas does not zero-fill OOB rows) - drop
        # them by global row index.  `needs_tail_mask` is decided at trace time
        # so fully-covered problem sizes pay nothing.
        row0 = (split * steps_per_split + step) * row_tile
        row_in_tile = jax.lax.broadcasted_iota(
            jnp.int32, (row_tile, _LANES), 0).reshape(g, _SUBLANES, _LANES)
        mask = mask & ((row0 + row_in_tile) < nrows)

    # ratio cancels algebraically: log(ip*r) - log(tgt*r) == log(ip) - log(tgt).
    ld = jnp.log(ip) - jnp.log(tgt)
    ld = jnp.where(mask, ld, 0.0)        # select blocks NaN/Inf of dropped lanes
    w = jnp.where(mask, 1.0, 0.0)

    # Pure vreg adds over the leading axis; the cross-sublane/lane reduction is
    # deferred to the tiny JAX epilogue.
    acc_ref[0] += jnp.sum(ld, axis=0)
    acc_ref[1] += jnp.sum(ld * ld, axis=0)
    acc_ref[2] += jnp.sum(w, axis=0)


def silog_loss(ip, target, ratio=10.0, ratio2=0.85):
    """Scale-invariant log loss (BTS SilogLoss.forward). Returns a scalar."""
    ip_flat = jnp.ravel(ip)
    tgt_flat = jnp.ravel(target)
    if not jnp.issubdtype(ip_flat.dtype, jnp.floating):
        ip_flat = ip_flat.astype(jnp.float32)
    if not jnp.issubdtype(tgt_flat.dtype, jnp.floating):
        tgt_flat = tgt_flat.astype(jnp.float32)
    n = ip_flat.shape[0]

    # Lane-dense (rows, 128) view of the flat stream.  Only when numel is not a
    # multiple of one f32 vreg (8*128) do we pad, by < 1024 elements with
    # target=0 (outside (1,81), so it never contributes).
    # TODO(synk): in that rare case the pad still materializes one copy; the
    # fully copy-free alternative is 1-D streaming blocks + in-kernel reshape
    # (or CompilerParams(allow_input_fusion=...)).
    pad = (-n) % (_SUBLANES * _LANES)
    if pad:
        ip_flat = jnp.pad(ip_flat, (0, pad), constant_values=1.0)
        tgt_flat = jnp.pad(tgt_flat, (0, pad), constant_values=0.0)
    rows = (n + pad) // _LANES

    ip2d = ip_flat.reshape(rows, _LANES)
    tgt2d = tgt_flat.reshape(rows, _LANES)

    # Tiling: one grid step for small inputs, 1 MiB input blocks for large ones
    # (2 inputs x 2 pipeline buffers = ~4 MiB VMEM, safe on v5e/v6e/v7x).
    row_tile = min(rows, _MAX_ROW_TILE)
    n_tiles = pl.cdiv(rows, row_tile)
    # Leading "parallel" axis lets v7x shard the stream over its 2 TensorCores.
    n_split = 2 if n_tiles >= 2 else 1
    steps_per_split = pl.cdiv(n_tiles, n_split)
    needs_tail_mask = (n_split * steps_per_split * row_tile) != rows

    def in_index(split, step):
        # Clamp so duplicate (fully masked in-kernel) tiles never DMA OOB.
        return (jnp.minimum(split * steps_per_split + step, n_tiles - 1), 0)

    partial = pl.pallas_call(
        functools.partial(
            _silog_partial_kernel,
            steps_per_split=steps_per_split,
            nrows=rows,
            needs_tail_mask=needs_tail_mask,
        ),
        out_shape=jax.ShapeDtypeStruct((n_split, 3, _SUBLANES, _LANES),
                                       jnp.float32),
        grid=(n_split, steps_per_split),
        in_specs=[
            pl.BlockSpec((row_tile, _LANES), in_index),
            pl.BlockSpec((row_tile, _LANES), in_index),
        ],
        out_specs=pl.BlockSpec((None, 3, _SUBLANES, _LANES),
                               lambda split, step: (split, 0, 0, 0)),
        compiler_params=pltpu.CompilerParams(
            dimension_semantics=("parallel", "arbitrary")),
    )(ip2d, tgt2d)

    # Tiny epilogue: (n_split, 3, 8, 128) partials -> scalar loss.
    sums = jnp.sum(partial, axis=(0, 2, 3))    # [sum(ld), sum(ld^2), count]
    count = sums[2]
    silog1 = sums[1] / count
    silog2 = ratio2 * (sums[0] / count) ** 2
    return jnp.sqrt(silog1 - silog2) * ratio


def silog_reference(ip, target, ratio=10.0, ratio2=0.85):
    """Pure-JAX mirror of the PyTorch forward (verification only)."""
    ipf = jnp.ravel(ip).astype(jnp.float32)
    tgt = jnp.ravel(target).astype(jnp.float32)
    mask = (tgt > 1.0) & (tgt < 81.0)
    w = mask.astype(jnp.float32)
    ld = (jnp.log(jnp.where(mask, ipf, 1.0) * ratio)
          - jnp.log(jnp.where(mask, tgt, 1.0) * ratio)) * w
    cnt = jnp.sum(w)
    silog1 = jnp.sum(ld * ld) / cnt
    silog2 = ratio2 * (jnp.sum(ld) / cnt) ** 2
    return jnp.sqrt(silog1 - silog2) * ratio


if __name__ == "__main__":
    key = jax.random.PRNGKey(0)
    cases = [
        ((2, 1, 16, 16), jnp.float32),     # tiny: single step, <1024-elem pad path
        ((2, 1, 64, 64), jnp.float32),     # copy-free single-step path
        ((2, 1, 64, 64), jnp.bfloat16),    # native sub-f32 streaming, in-kernel widen
        ((1, 1, 480, 640), jnp.float32),   # 2 tiles: ragged last tile + 2-way split
        ((1, 1, 608, 1024), jnp.float32),  # 3 tiles: clamped duplicate tile path
    ]
    for shape, ip_dtype in cases:
        key, k1, k2 = jax.random.split(key, 3)
        # Predicted depth: positive.  Target depth spans [0, 100) so the (1, 81)
        # validity mask keeps ~80% of pixels and drops the rest.
        ip = jax.random.uniform(k1, shape, ip_dtype, 0.5, 90.0)
        target = jax.random.uniform(k2, shape, jnp.float32, 0.0, 100.0)

        out = jax.block_until_ready(silog_loss(ip, target))
        ref = jax.block_until_ready(silog_reference(ip, target))

        assert out.shape == (), (shape, out.shape)
        assert bool(jnp.isfinite(out)), (shape, float(out))
        assert jnp.allclose(out, ref, rtol=1e-4, atol=1e-6), \
            (shape, float(out), float(ref))
    print("KERNEL_OK")
</pallas_src>

<mosaic_0001>
module attributes {stable_mosaic.version = 11 : i64} {
  func.func @_silog_partial_kernel(%arg0: i32, %arg1: i32, %arg2: memref<8x128xf32, #tpu.memory_space<vmem>>, %arg3: memref<8x128xf32, #tpu.memory_space<vmem>>, %arg4: memref<1x3x8x128xf32, #tpu.memory_space<vmem>>) attributes {dimension_semantics = [#tpu.dimension_semantics<parallel>, #tpu.dimension_semantics<arbitrary>], iteration_bounds = array<i64: 1, 1>, scalar_prefetch = 0 : i64, scratch_operands = 0 : i64, tpu.core_type = #tpu.core_type<tc>, window_params = [{transform_indices = @transform_0, window_bounds = array<i64: 8, 128>}, {transform_indices = @transform_1, window_bounds = array<i64: 8, 128>}, {transform_indices = @transform_2, window_bounds = array<i64: 1, 3, 8, 128>}]} {
    %c0_i32 = arith.constant 0 : i32
    %0 = arith.cmpi eq, %arg1, %c0_i32 : i32
    %1 = arith.extui %0 : i1 to i32
    %c0_i32_0 = arith.constant 0 : i32
    %2 = arith.cmpi ne, %1, %c0_i32_0 : i32
    scf.if %2 {
      %cst_33 = arith.constant 0.000000e+00 : f32
      %42 = vector.broadcast %cst_33 : f32 to vector<3x8x128xf32>
      %c0_34 = arith.constant 0 : index
      %c0_35 = arith.constant 0 : index
      %c0_36 = arith.constant 0 : index
      %c0_37 = arith.constant 0 : index
      %43 = vector.load %arg4[%c0_34, %c0_35, %c0_36, %c0_37] : memref<1x3x8x128xf32, #tpu.memory_space<vmem>>, vector<1x3x8x128xf32>
      %44 = vector.shape_cast %43 : vector<1x3x8x128xf32> to vector<3x8x128xf32>
      %45 = vector.shape_cast %42 : vector<3x8x128xf32> to vector<1x3x8x128xf32>
      tpu.vector_store %arg4[%c0_34, %c0_35, %c0_36, %c0_37], %45 {strides = array<i32>} : memref<1x3x8x128xf32, #tpu.memory_space<vmem>>, vector<1x3x8x128xf32>,
    } else {
    }
    %c0 = arith.constant 0 : index
    %c0_1 = arith.constant 0 : index
    %3 = vector.load %arg2[%c0, %c0_1] : memref<8x128xf32, #tpu.memory_space<vmem>>, vector<8x128xf32>
    %4 = vector.shape_cast %3 : vector<8x128xf32> to vector<1x8x128xf32>
    %c0_2 = arith.constant 0 : index
    %c0_3 = arith.constant 0 : index
    %5 = vector.load %arg3[%c0_2, %c0_3] : memref<8x128xf32, #tpu.memory_space<vmem>>, vector<8x128xf32>
    %6 = vector.shape_cast %5 : vector<8x128xf32> to vector<1x8x128xf32>
    %cst = arith.constant 1.000000e+00 : f32
    %7 = vector.broadcast %cst : f32 to vector<1x8x128xf32>
    %8 = arith.cmpf ogt, %6, %7 : vector<1x8x128xf32>
    %cst_4 = arith.constant 8.100000e+01 : f32
    %9 = vector.broadcast %cst_4 : f32 to vector<1x8x128xf32>
    %10 = arith.cmpf olt, %6, %9 : vector<1x8x128xf32>
    %11 = arith.andi %8, %10 : vector<1x8x128xi1>
    %12 = math.log %4 : vector<1x8x128xf32>
    %13 = math.log %6 : vector<1x8x128xf32>
    %14 = arith.subf %12, %13 : vector<1x8x128xf32>
    %cst_5 = arith.constant 0.000000e+00 : f32
    %15 = vector.broadcast %cst_5 : f32 to vector<1x8x128xf32>
    %16 = arith.select %11, %14, %15 : vector<1x8x128xi1>, vector<1x8x128xf32>
    %cst_6 = arith.constant 1.000000e+00 : f32
    %cst_7 = arith.constant 0.000000e+00 : f32
    %17 = vector.broadcast %cst_6 : f32 to vector<1x8x128xf32>
    %18 = vector.broadcast %cst_7 : f32 to vector<1x8x128xf32>
    %19 = arith.select %11, %17, %18 : vector<1x8x128xi1>, vector<1x8x128xf32>
    %c0_8 = arith.constant 0 : index
    %c0_9 = arith.constant 0 : index
    %c0_10 = arith.constant 0 : index
    %c0_11 = arith.constant 0 : index
    %20 = vector.load %arg4[%c0_8, %c0_9, %c0_10, %c0_11] : memref<1x3x8x128xf32, #tpu.memory_space<vmem>>, vector<1x1x8x128xf32>
    %21 = vector.shape_cast %20 : vector<1x1x8x128xf32> to vector<8x128xf32>
    %cst_12 = arith.constant dense<0.000000e+00> : vector<8x128xf32>
    %22 = vector.multi_reduction <add>, %16, %cst_12 [0] : vector<1x8x128xf32> to vector<8x128xf32>
    %23 = arith.addf %21, %22 : vector<8x128xf32>
    %c0_13 = arith.constant 0 : index
    %c0_14 = arith.constant 0 : index
    %c0_15 = arith.constant 0 : index
    %c0_16 = arith.constant 0 : index
    %24 = vector.load %arg4[%c0_13, %c0_14, %c0_15, %c0_16] : memref<1x3x8x128xf32, #tpu.memory_space<vmem>>, vector<1x1x8x128xf32>
    %25 = vector.shape_cast %24 : vector<1x1x8x128xf32> to vector<8x128xf32>
    %26 = vector.shape_cast %23 : vector<8x128xf32> to vector<1x1x8x128xf32>
    tpu.vector_store %arg4[%c0_13, %c0_14, %c0_15, %c0_16], %26 {strides = array<i32>} : memref<1x3x8x128xf32, #tpu.memory_space<vmem>>, vector<1x1x8x128xf32>,
    %c0_17 = arith.constant 0 : index
    %c1 = arith.constant 1 : index
    %c0_18 = arith.constant 0 : index
    %c0_19 = arith.constant 0 : index
    %27 = vector.load %arg4[%c0_17, %c1, %c0_18, %c0_19] : memref<1x3x8x128xf32, #tpu.memory_space<vmem>>, vector<1x1x8x128xf32>
    %28 = vector.shape_cast %27 : vector<1x1x8x128xf32> to vector<8x128xf32>
    %29 = arith.mulf %16, %16 : vector<1x8x128xf32>
    %cst_20 = arith.constant dense<0.000000e+00> : vector<8x128xf32>
    %30 = vector.multi_reduction <add>, %29, %cst_20 [0] : vector<1x8x128xf32> to vector<8x128xf32>
    %31 = arith.addf %28, %30 : vector<8x128xf32>
    %c0_21 = arith.constant 0 : index
    %c1_22 = arith.constant 1 : index
    %c0_23 = arith.constant 0 : index
    %c0_24 = arith.constant 0 : index
    %32 = vector.load %arg4[%c0_21, %c1_22, %c0_23, %c0_24] : memref<1x3x8x128xf32, #tpu.memory_space<vmem>>, vector<1x1x8x128xf32>
    %33 = vector.shape_cast %32 : vector<1x1x8x128xf32> to vector<8x128xf32>
    %34 = vector.shape_cast %31 : vector<8x128xf32> to vector<1x1x8x128xf32>
    tpu.vector_store %arg4[%c0_21, %c1_22, %c0_23, %c0_24], %34 {strides = array<i32>} : memref<1x3x8x128xf32, #tpu.memory_space<vmem>>, vector<1x1x8x128xf32>,
    %c0_25 = arith.constant 0 : index
    %c2 = arith.constant 2 : index
    %c0_26 = arith.constant 0 : index
    %c0_27 = arith.constant 0 : index
    %35 = vector.load %arg4[%c0_25, %c2, %c0_26, %c0_27] : memref<1x3x8x128xf32, #tpu.memory_space<vmem>>, vector<1x1x8x128xf32>
    %36 = vector.shape_cast %35 : vector<1x1x8x128xf32> to vector<8x128xf32>
    %cst_28 = arith.constant dense<0.000000e+00> : vector<8x128xf32>
    %37 = vector.multi_reduction <add>, %19, %cst_28 [0] : vector<1x8x128xf32> to vector<8x128xf32>
    %38 = arith.addf %36, %37 : vector<8x128xf32>
    %c0_29 = arith.constant 0 : index
    %c2_30 = arith.constant 2 : index
    %c0_31 = arith.constant 0 : index
    %c0_32 = arith.constant 0 : index
    %39 = vector.load %arg4[%c0_29, %c2_30, %c0_31, %c0_32] : memref<1x3x8x128xf32, #tpu.memory_space<vmem>>, vector<1x1x8x128xf32>
    %40 = vector.shape_cast %39 : vector<1x1x8x128xf32> to vector<8x128xf32>
    %41 = vector.shape_cast %38 : vector<8x128xf32> to vector<1x1x8x128xf32>
    tpu.vector_store %arg4[%c0_29, %c2_30, %c0_31, %c0_32], %41 {strides = array<i32>} : memref<1x3x8x128xf32, #tpu.memory_space<vmem>>, vector<1x1x8x128xf32>,
    return
  }
  func.func @transform_0(%arg0: i32, %arg1: i32) -> (i32, i32) {
    %c1_i32 = arith.constant 1 : i32
    %0 = arith.muli %arg0, %c1_i32 : i32
    %1 = arith.addi %0, %arg1 : i32
    %c0_i32 = arith.constant 0 : i32
    %2 = arith.minsi %1, %c0_i32 : i32
    %c0_i32_0 = arith.constant 0 : i32
    %c0_i32_1 = arith.constant 0 : i32
    return %2, %c0_i32_0 : i32, i32
  }
  func.func @transform_1(%arg0: i32, %arg1: i32) -> (i32, i32) {
    %c1_i32 = arith.constant 1 : i32
    %0 = arith.muli %arg0, %c1_i32 : i32
    %1 = arith.addi %0, %arg1 : i32
    %c0_i32 = arith.constant 0 : i32
    %2 = arith.minsi %1, %c0_i32 : i32
    %c0_i32_0 = arith.constant 0 : i32
    %c0_i32_1 = arith.constant 0 : i32
    return %2, %c0_i32_0 : i32, i32
  }
  func.func @transform_2(%arg0: i32, %arg1: i32) -> (i32, i32, i32, i32) {
    %c0_i32 = arith.constant 0 : i32
    %c0_i32_0 = arith.constant 0 : i32
    %c0_i32_1 = arith.constant 0 : i32
    %c0_i32_2 = arith.constant 0 : i32
    return %arg0, %c0_i32, %c0_i32_0, %c0_i32_1 : i32, i32, i32, i32
  }
}

</mosaic_0001>

<bundles_post_ra>
// kernel: tpu_custom_call.1
= control target key start
LH: loop header
LB: loop body
LE: loop exit
PB: predicated region body
PF: predicated region fallthrough
CT: control target
= control target key end

     0   :  { %7 = vsyncpa [#allocation3], 0  ;;  %s232_s0 = inlined_call_operand.hbm [shape: f32[8,128], index: 0, kind: input, shape index: {}]   ;;  %s233_s1 = inlined_call_operand.hbm [shape: f32[8,128], index: 1, kind: input, shape index: {}]   ;;  %s234_s2 = inlined_call_operand.hbm [shape: f32[1,3,8,128], index: 2, kind: output, shape index: {}]  }
   0x1   :  { %8 = vsyncpa [#allocation6], 0 }
   0x2   :  { %9 = vsyncpa [#allocation4], 0  ;;  %s20_s11 = sshll.u32 %s232_s0, 4  ;;  %s202_s12 = smov [#allocation2]   ;;  %s21_s11 = int_to_ptr.hbm [resolvable:$true] %s20_s11 }
   0x3   :  { %s22_s13 = sshll.u32 %s202_s12, 4  ;;  %s36_s16 = sshll.u32 %s233_s1, 4  ;;  %s23_s13 = int_to_ptr.vmem [resolvable:$true] %s22_s13  ;;  %s37_s16 = int_to_ptr.hbm [resolvable:$true] %s36_s16 }
   0x4   :  { %25 = dma.hbm_to_vmem [thread:$0]  %s21_s11, 128, %s23_s13, [#allocation3]  }
   0x5   :  { %s203_s17 = smov [#allocation5]  }
   0x6   :  { %s38_s18 = sshll.u32 %s203_s17, 4  ;;  %s39_s18 = int_to_ptr.vmem [resolvable:$true] %s38_s18 }
   0x7   :  { %41 = dma.hbm_to_vmem [thread:$0]  %s37_s16, 128, %s39_s18, [#allocation6]  }
   0x8   :  { %196 = dma.done.wait [#allocation3], 128  }
   0x9   :  { %197 = vsyncadd [#allocation3], 4294967168 }
   0xa   :  { %198 = dma.done.wait [#allocation6], 128  }
   0xb   :  { %199 = vsyncadd [#allocation6], 4294967168  ;;  %v63_v0 = vld [vmem:[#allocation2] sm:$0xff]  ;;  %v64_v1 = vld [vmem:[#allocation5] sm:$0xff]  ;;  %v204_v2 = vmov 0.0   ;;  %s205_s0 = smov [#allocation7]  }
   0xc   :  { %vm65_vm0 = vcmp.gt.f32.partialorder %v64_v1, 1.0  ;;  %vm66_vm1 = vcmp.lt.f32.partialorder %v64_v1, 81.0  ;;  %120 = vlog2.f32 %v63_v0  ;;  %s94_s1 = sshll.u32 %s205_s0, 4  ;;  %s96_s21 = sshll.u32 %s234_s2, 4  ;;  %s95_s1 = int_to_ptr.vmem [resolvable:$true] %s94_s1  ;;  %s97_s21 = int_to_ptr.hbm [resolvable:$true] %s96_s21 }
   0xd   :  { %vm67_vm2 = vmand %vm65_vm0, %vm66_vm1  ;;  %122 = vlog2.f32 %v64_v1  ;;  %s206_s22 = smov 128   ;;  %s207_s23 = smov 8  }
   0xe   :  { %v74_v3 = vsel %vm67_vm2, 1.0, %v204_v2 }
   0xf   :  { %89 = vst [vmem:[#allocation7 + $0x10] sm:$0xff] %v74_v3 }
  0x12   :  { %v121_v4 = vpop.eup %120 }
  0x13   :  { %v123_v5 = vpop.eup %122  ;;  %v69_v6 = vmul.f32 0.6931472, %v121_v4 }
  0x14   :  { %v71_v7 = vmul.f32 0.6931472, %v123_v5 }
  0x16   :  { %v72_v8 = vsub.f32 %v69_v6, %v71_v7 }
  0x18   :  { %v73_v9 = vsel %vm67_vm2, %v72_v8, 0.0 }
  0x19   :  { %v81_v10 = vmul.f32 %v73_v9, %v73_v9  ;;  %78 = vst [vmem:[#allocation7] sm:$0xff] %v73_v9 }
  0x1b   :  { %84 = vst [vmem:[#allocation7 + $0x8] sm:$0xff] %v81_v10 }
  0x1c   :  { %102 = dma.vmem_to_hbm [thread:$0]  %s95_s1, 384, %s97_s21, [#allocation4], %s206_s22, %s206_s22, %s207_s23  }
  0x1d   :  { %200 = dma.done.wait [#allocation4], 384  }
  0x1e   :  { %201 = vsyncadd [#allocation4], 4294966912 }
  0x1f   :  { %107 = vsyncpa [#allocation3], 1 }
  0x20   :  { %108 = vsyncpa [#allocation6], 1 }
  0x21   :  { %109 = vsyncpa [#allocation4], 1 }

</bundles_post_ra>
